<compile_context>
chip_gen: v7x
topology: tpu7x:2x2x1
jax: 0.10.0
libtpu: 0.0.40
codegen_flags: <defaults>
</compile_context>

<pallas_src>
import jax
import jax.numpy as jnp
from jax.experimental import pallas as pl
from jax.experimental.pallas import tpu as pltpu


def _round_up(x, m):
    return ((x + m - 1) // m) * m


def _fused_conv1d_kernel(x_ref, w_ref, b_ref, o_ref, hp_ref):
    """Whole network for ONE batch element (grid axis = batch).

    x_ref:  (1, S, Cin)        real input channels only (no lane padding)
    w_ref:  (L, K, C, C)       bf16 per-layer / per-tap weights (resident)
    b_ref:  (L, 1, C)          f32 per-layer biases (resident)
    o_ref:  (1, out_ch, S_out) lane-dense output (S in the lane dimension)
    hp_ref: (S + 2*pad, C)     f32 halo scratch reused across layers
    """
    f32 = jnp.float32
    S = x_ref.shape[1]
    cin = x_ref.shape[2]
    C = hp_ref.shape[-1]
    num_layers = w_ref.shape[0]
    ksize = w_ref.shape[1]
    out_ch = o_ref.shape[1]
    S_out = o_ref.shape[2]
    pad = (ksize - 1) // 2

    # ---- stage input into the halo scratch --------------------------------
    # Halo rows and padded channel lanes are zeros; zeros propagate exactly
    # through every layer (zero weight rows/cols, zero bias, ReLU(0)=0).
    if pad > 0:
        zrow = jnp.zeros((pad, C), f32)
        hp_ref[0:pad, :] = zrow
        hp_ref[pad + S:pad + S + pad, :] = zrow
    x0 = x_ref[0].astype(f32)                                    # (S, cin)
    if C > cin:
        x0 = jnp.concatenate([x0, jnp.zeros((S, C - cin), f32)], axis=-1)
    hp_ref[pad:pad + S, :] = x0                                  # (S, C)

    # ---- layers (static unroll) --------------------------------------------
    last = None
    for l in range(num_layers):
        hpv = hp_ref[...]                                        # (S+2p, C) f32
        acc = None
        for k in range(ksize):                                   # K accumulate-dots
            xs = hpv[k:k + S, :].astype(jnp.bfloat16)            # bf16 MXU LHS
            d = jnp.dot(xs, w_ref[l, k],
                        preferred_element_type=f32)              # (S, C) f32
            acc = d if acc is None else acc + d
        acc = acc + b_ref[l]                                     # (1, C) f32 bcast
        if l < num_layers - 1:
            acc = jnp.maximum(acc, 0.0)                          # ReLU (f32)
            # dropout: identity in eval mode
            hp_ref[pad:pad + S, :] = acc                         # next layer input
        else:
            last = acc                                           # (S, C) f32

    # ---- lane-dense output: (out_ch, S_out) with S in the lane dim --------
    # Pad rows S -> S_out first so the transpose is fully (8,128)-tile aligned
    # and the zero rows become exactly the zero lane-padding of the output.
    if S_out > S:
        last = jnp.concatenate([last, jnp.zeros((S_out - S, C), f32)], axis=0)
    res_t = jnp.transpose(last)                                  # (C, S_out)
    o_ref[0] = res_t[:out_ch, :].astype(o_ref.dtype)


def pack_params(params, lane_width=128):
    """Pack per-layer (w [K, Cin, Cout], b [Cout]) into resident slabs.

    Returns (w_all [L, K, C, C] bf16, b_all [L, 1, C] f32, C) with C a
    multiple of 128 (lane-dense).
    """
    L = len(params)
    K = params[0][0].shape[0]
    max_ch = max(max(w.shape[1], w.shape[2]) for w, _ in params)
    C = _round_up(max(max_ch, 1), lane_width)
    w_all = jnp.zeros((L, K, C, C), jnp.float32)
    b_all = jnp.zeros((L, 1, C), jnp.float32)
    for l, (w, b) in enumerate(params):
        _, cin, cout = w.shape
        w_all = w_all.at[l, :, :cin, :cout].set(w)
        b_all = b_all.at[l, 0, :cout].set(b)
    return w_all.astype(jnp.bfloat16), b_all, C


def init_params(key, seq_length, hidden_dim, num_layers=5, use_forces=False,
                kernel_size=3):
    """Deterministic init mirroring the module's Conv1d layer shapes.

    Returns list of (w, b) with w: [K, Cin, Cout], b: [Cout].
    (PyTorch Conv1d weight is [Cout, Cin, K]; stored transposed.)
    """
    input_dim = 6 if use_forces else 3
    params = []
    for i in range(num_layers):
        in_ch = input_dim if i == 0 else hidden_dim
        out_ch = hidden_dim if i < num_layers - 1 else 3
        key, kw, kb = jax.random.split(key, 3)
        fan_in = in_ch * kernel_size
        bound = 1.0 / (fan_in ** 0.5)
        w = jax.random.uniform(kw, (kernel_size, in_ch, out_ch),
                               jnp.float32, -bound, bound)
        b = jax.random.uniform(kb, (out_ch,), jnp.float32, -bound, bound)
        params.append((w, b))
    return params


def noise_predictor_conv1d(params, noisy_trajectory, forces=None,
                           use_forces=False):
    """Forward pass. noisy_trajectory: [B, S, 3] -> [B, S, 3]."""
    if use_forces:
        x = jnp.concatenate([noisy_trajectory, forces], axis=-1)
    else:
        x = noisy_trajectory
    x = x.astype(jnp.float32)
    B, S, Cin = x.shape
    L = len(params)
    K = params[0][0].shape[0]
    out_ch = params[-1][0].shape[2]
    pad = (K - 1) // 2

    w_all, b_all, C = pack_params(params)      # bf16 (L,K,C,C), f32 (L,1,C)
    S_out = _round_up(S, 128)

    flops = 2 * L * K * B * S * C * C
    bytes_accessed = int(x.size * 4 + w_all.size * 2 + b_all.size * 4
                         + B * S * out_ch * 4)

    out_t = pl.pallas_call(
        _fused_conv1d_kernel,
        out_shape=jax.ShapeDtypeStruct((B, out_ch, S_out), jnp.float32),
        grid_spec=pltpu.PrefetchScalarGridSpec(
            num_scalar_prefetch=0,
            grid=(B,),                                        # 1 trajectory/step
            in_specs=[
                pl.BlockSpec((1, S, Cin), lambda b: (b, 0, 0)),
                pl.BlockSpec((L, K, C, C), lambda b: (0, 0, 0, 0)),  # resident
                pl.BlockSpec((L, 1, C), lambda b: (0, 0, 0)),        # resident
            ],
            out_specs=pl.BlockSpec((1, out_ch, S_out), lambda b: (b, 0, 0)),
            scratch_shapes=[pltpu.VMEM((S + 2 * pad, C), jnp.float32)],
        ),
        compiler_params=pltpu.CompilerParams(
            dimension_semantics=("parallel",),                # v7x: both TCs
            vmem_limit_bytes=32 * 1024 * 1024),
        cost_estimate=pl.CostEstimate(flops=flops, transcendentals=0,
                                      bytes_accessed=bytes_accessed),
    )(x, w_all, b_all)

    # (B, out_ch, S_out) lane-dense -> (B, S, out_ch)
    return jnp.transpose(out_t[:, :, :S], (0, 2, 1))


if __name__ == "__main__":
    batch = 2
    seq_length = 8
    hidden_dim = 32
    num_layers = 5
    use_forces = False

    key = jax.random.PRNGKey(0)
    key, kx = jax.random.split(key)
    noisy_trajectory = jax.random.normal(kx, (batch, seq_length, 3),
                                         jnp.float32)

    params = init_params(key, seq_length, hidden_dim, num_layers, use_forces)

    out = noise_predictor_conv1d(params, noisy_trajectory,
                                 use_forces=use_forces)
    out = jax.block_until_ready(out)
    assert out.shape == (batch, seq_length, 3), out.shape

    # Reference (plain JAX lax conv); matmul_dtype controls conv input precision.
    def ref_forward(params, x, matmul_dtype):
        h = x.astype(jnp.float32)
        n = len(params)
        for i, (w, b) in enumerate(params):
            y = jax.lax.conv_general_dilated(
                h.astype(matmul_dtype), w.astype(matmul_dtype),
                window_strides=(1,), padding="SAME",
                dimension_numbers=("NWC", "WIO", "NWC"),
                preferred_element_type=jnp.float32)
            y = y + b[None, None, :]
            if i < n - 1:
                y = jnp.maximum(y, 0.0)
            h = y
        return h

    # Tight check vs a reference mirroring the kernel precision (bf16 matmul
    # inputs, f32 accumulation).
    ref_bf16 = ref_forward(params, noisy_trajectory, jnp.bfloat16)
    err_bf16 = float(jnp.max(jnp.abs(out - ref_bf16)))
    assert jnp.allclose(out, ref_bf16, atol=2e-3, rtol=2e-3), err_bf16

    # Loose sanity check vs the pure-f32 forward (bf16 rounding tolerance).
    ref_f32 = ref_forward(params, noisy_trajectory, jnp.float32)
    err_f32 = float(jnp.max(jnp.abs(out - ref_f32)))
    assert jnp.allclose(out, ref_f32, atol=5e-2), err_f32

    print("KERNEL_OK")
</pallas_src>

<mosaic_0001>
module attributes {stable_mosaic.version = 11 : i64} {
  func.func @_fused_conv1d_kernel(%arg0: i32, %arg1: memref<1x8x3xf32, #tpu.memory_space<vmem>>, %arg2: memref<5x3x128x128xbf16, #tpu.memory_space<vmem>>, %arg3: memref<5x1x128xf32, #tpu.memory_space<vmem>>, %arg4: memref<1x3x128xf32, #tpu.memory_space<vmem>>, %arg5: memref<10x128xf32, #tpu.memory_space<vmem>>) attributes {dimension_semantics = [#tpu.dimension_semantics<parallel>], iteration_bounds = array<i64: 2>, scalar_prefetch = 0 : i64, scratch_operands = 1 : i64, tpu.core_type = #tpu.core_type<tc>, window_params = [{transform_indices = @transform_0, window_bounds = array<i64: 1, 8, 3>}, {pipeline_mode = #tpu.pipeline_mode<synchronous>, transform_indices = @transform_1, window_bounds = array<i64: 5, 3, 128, 128>}, {pipeline_mode = #tpu.pipeline_mode<synchronous>, transform_indices = @transform_2, window_bounds = array<i64: 5, 1, 128>}, {transform_indices = @transform_3, window_bounds = array<i64: 1, 3, 128>}]} {
    %cst = arith.constant 0.000000e+00 : f32
    %0 = vector.broadcast %cst : f32 to vector<1x128xf32>
    %c0 = arith.constant 0 : index
    %c0_0 = arith.constant 0 : index
    %1 = vector.load %arg5[%c0, %c0_0] : memref<10x128xf32, #tpu.memory_space<vmem>>, vector<1x128xf32>
    tpu.vector_store %arg5[%c0, %c0_0], %0 {strides = array<i32>} : memref<10x128xf32, #tpu.memory_space<vmem>>, vector<1x128xf32>,
    %c9 = arith.constant 9 : index
    %c0_1 = arith.constant 0 : index
    %2 = vector.load %arg5[%c9, %c0_1] : memref<10x128xf32, #tpu.memory_space<vmem>>, vector<1x128xf32>
    tpu.vector_store %arg5[%c9, %c0_1], %0 {strides = array<i32>} : memref<10x128xf32, #tpu.memory_space<vmem>>, vector<1x128xf32>,
    %c0_2 = arith.constant 0 : index
    %c0_3 = arith.constant 0 : index
    %c0_4 = arith.constant 0 : index
    %3 = vector.load %arg1[%c0_2, %c0_3, %c0_4] : memref<1x8x3xf32, #tpu.memory_space<vmem>>, vector<1x8x3xf32>
    %4 = vector.shape_cast %3 : vector<1x8x3xf32> to vector<8x3xf32>
    %cst_5 = arith.constant 0.000000e+00 : f32
    %5 = vector.broadcast %cst_5 : f32 to vector<8x125xf32>
    %6 = tpu.concatenate %4, %5 in 1 : vector<8x3xf32>, vector<8x125xf32> -> vector<8x128xf32>
    %c1 = arith.constant 1 : index
    %c0_6 = arith.constant 0 : index
    %7 = vector.load %arg5[%c1, %c0_6] : memref<10x128xf32, #tpu.memory_space<vmem>>, vector<8x128xf32>
    tpu.vector_store %arg5[%c1, %c0_6], %6 {strides = array<i32>} : memref<10x128xf32, #tpu.memory_space<vmem>>, vector<8x128xf32>,
    %c0_7 = arith.constant 0 : index
    %c0_8 = arith.constant 0 : index
    %8 = vector.load %arg5[%c0_7, %c0_8] : memref<10x128xf32, #tpu.memory_space<vmem>>, vector<10x128xf32>
    %9 = vector.extract_strided_slice %8 {offsets = [0, 0], sizes = [8, 128], strides = [1, 1]} : vector<10x128xf32> to vector<8x128xf32>
    %10 = arith.truncf %9 : vector<8x128xf32> to vector<8x128xbf16>
    %c0_9 = arith.constant 0 : index
    %c0_10 = arith.constant 0 : index
    %c0_11 = arith.constant 0 : index
    %c0_12 = arith.constant 0 : index
    %11 = vector.load %arg2[%c0_9, %c0_10, %c0_11, %c0_12] : memref<5x3x128x128xbf16, #tpu.memory_space<vmem>>, vector<1x1x128x128xbf16>
    %12 = vector.shape_cast %11 : vector<1x1x128x128xbf16> to vector<128x128xbf16>
    %cst_13 = arith.constant dense<0.000000e+00> : vector<8x128xf32>
    %13 = tpu.matmul %10, %12, %cst_13 {dimension_numbers = #tpu.dot_dimension_numbers<[1], [0], [0], [1], [0, 0, 1, 1], [], []>} : vector<8x128xbf16>, vector<128x128xbf16>, vector<8x128xf32> -> vector<8x128xf32>
    %14 = vector.extract_strided_slice %8 {offsets = [1, 0], sizes = [8, 128], strides = [1, 1]} : vector<10x128xf32> to vector<8x128xf32>
    %15 = arith.truncf %14 : vector<8x128xf32> to vector<8x128xbf16>
    %c0_14 = arith.constant 0 : index
    %c1_15 = arith.constant 1 : index
    %c0_16 = arith.constant 0 : index
    %c0_17 = arith.constant 0 : index
    %16 = vector.load %arg2[%c0_14, %c1_15, %c0_16, %c0_17] : memref<5x3x128x128xbf16, #tpu.memory_space<vmem>>, vector<1x1x128x128xbf16>
    %17 = vector.shape_cast %16 : vector<1x1x128x128xbf16> to vector<128x128xbf16>
    %cst_18 = arith.constant dense<0.000000e+00> : vector<8x128xf32>
    %18 = tpu.matmul %15, %17, %cst_18 {dimension_numbers = #tpu.dot_dimension_numbers<[1], [0], [0], [1], [0, 0, 1, 1], [], []>} : vector<8x128xbf16>, vector<128x128xbf16>, vector<8x128xf32> -> vector<8x128xf32>
    %19 = arith.addf %13, %18 : vector<8x128xf32>
    %20 = vector.extract_strided_slice %8 {offsets = [2, 0], sizes = [8, 128], strides = [1, 1]} : vector<10x128xf32> to vector<8x128xf32>
    %21 = arith.truncf %20 : vector<8x128xf32> to vector<8x128xbf16>
    %c0_19 = arith.constant 0 : index
    %c2 = arith.constant 2 : index
    %c0_20 = arith.constant 0 : index
    %c0_21 = arith.constant 0 : index
    %22 = vector.load %arg2[%c0_19, %c2, %c0_20, %c0_21] : memref<5x3x128x128xbf16, #tpu.memory_space<vmem>>, vector<1x1x128x128xbf16>
    %23 = vector.shape_cast %22 : vector<1x1x128x128xbf16> to vector<128x128xbf16>
    %cst_22 = arith.constant dense<0.000000e+00> : vector<8x128xf32>
    %24 = tpu.matmul %21, %23, %cst_22 {dimension_numbers = #tpu.dot_dimension_numbers<[1], [0], [0], [1], [0, 0, 1, 1], [], []>} : vector<8x128xbf16>, vector<128x128xbf16>, vector<8x128xf32> -> vector<8x128xf32>
    %25 = arith.addf %19, %24 : vector<8x128xf32>
    %c0_23 = arith.constant 0 : index
    %c0_24 = arith.constant 0 : index
    %c0_25 = arith.constant 0 : index
    %26 = vector.load %arg3[%c0_23, %c0_24, %c0_25] : memref<5x1x128xf32, #tpu.memory_space<vmem>>, vector<1x1x128xf32>
    %27 = vector.shape_cast %26 : vector<1x1x128xf32> to vector<1x128xf32>
    %28 = vector.broadcast %27 : vector<1x128xf32> to vector<8x128xf32>
    %29 = arith.addf %25, %28 : vector<8x128xf32>
    %cst_26 = arith.constant 0.000000e+00 : f32
    %30 = vector.broadcast %cst_26 : f32 to vector<8x128xf32>
    %31 = arith.maximumf %29, %30 : vector<8x128xf32>
    %c1_27 = arith.constant 1 : index
    %c0_28 = arith.constant 0 : index
    %32 = vector.load %arg5[%c1_27, %c0_28] : memref<10x128xf32, #tpu.memory_space<vmem>>, vector<8x128xf32>
    tpu.vector_store %arg5[%c1_27, %c0_28], %31 {strides = array<i32>} : memref<10x128xf32, #tpu.memory_space<vmem>>, vector<8x128xf32>,
    %c0_29 = arith.constant 0 : index
    %c0_30 = arith.constant 0 : index
    %33 = vector.load %arg5[%c0_29, %c0_30] : memref<10x128xf32, #tpu.memory_space<vmem>>, vector<10x128xf32>
    %34 = vector.extract_strided_slice %33 {offsets = [0, 0], sizes = [8, 128], strides = [1, 1]} : vector<10x128xf32> to vector<8x128xf32>
    %35 = arith.truncf %34 : vector<8x128xf32> to vector<8x128xbf16>
    %c1_31 = arith.constant 1 : index
    %c0_32 = arith.constant 0 : index
    %c0_33 = arith.constant 0 : index
    %c0_34 = arith.constant 0 : index
    %36 = vector.load %arg2[%c1_31, %c0_32, %c0_33, %c0_34] : memref<5x3x128x128xbf16, #tpu.memory_space<vmem>>, vector<1x1x128x128xbf16>
    %37 = vector.shape_cast %36 : vector<1x1x128x128xbf16> to vector<128x128xbf16>
    %cst_35 = arith.constant dense<0.000000e+00> : vector<8x128xf32>
    %38 = tpu.matmul %35, %37, %cst_35 {dimension_numbers = #tpu.dot_dimension_numbers<[1], [0], [0], [1], [0, 0, 1, 1], [], []>} : vector<8x128xbf16>, vector<128x128xbf16>, vector<8x128xf32> -> vector<8x128xf32>
    %39 = vector.extract_strided_slice %33 {offsets = [1, 0], sizes = [8, 128], strides = [1, 1]} : vector<10x128xf32> to vector<8x128xf32>
    %40 = arith.truncf %39 : vector<8x128xf32> to vector<8x128xbf16>
    %c1_36 = arith.constant 1 : index
    %c1_37 = arith.constant 1 : index
    %c0_38 = arith.constant 0 : index
    %c0_39 = arith.constant 0 : index
    %41 = vector.load %arg2[%c1_36, %c1_37, %c0_38, %c0_39] : memref<5x3x128x128xbf16, #tpu.memory_space<vmem>>, vector<1x1x128x128xbf16>
    %42 = vector.shape_cast %41 : vector<1x1x128x128xbf16> to vector<128x128xbf16>
    %cst_40 = arith.constant dense<0.000000e+00> : vector<8x128xf32>
    %43 = tpu.matmul %40, %42, %cst_40 {dimension_numbers = #tpu.dot_dimension_numbers<[1], [0], [0], [1], [0, 0, 1, 1], [], []>} : vector<8x128xbf16>, vector<128x128xbf16>, vector<8x128xf32> -> vector<8x128xf32>
    %44 = arith.addf %38, %43 : vector<8x128xf32>
    %45 = vector.extract_strided_slice %33 {offsets = [2, 0], sizes = [8, 128], strides = [1, 1]} : vector<10x128xf32> to vector<8x128xf32>
    %46 = arith.truncf %45 : vector<8x128xf32> to vector<8x128xbf16>
    %c1_41 = arith.constant 1 : index
    %c2_42 = arith.constant 2 : index
    %c0_43 = arith.constant 0 : index
    %c0_44 = arith.constant 0 : index
    %47 = vector.load %arg2[%c1_41, %c2_42, %c0_43, %c0_44] : memref<5x3x128x128xbf16, #tpu.memory_space<vmem>>, vector<1x1x128x128xbf16>
    %48 = vector.shape_cast %47 : vector<1x1x128x128xbf16> to vector<128x128xbf16>
    %cst_45 = arith.constant dense<0.000000e+00> : vector<8x128xf32>
    %49 = tpu.matmul %46, %48, %cst_45 {dimension_numbers = #tpu.dot_dimension_numbers<[1], [0], [0], [1], [0, 0, 1, 1], [], []>} : vector<8x128xbf16>, vector<128x128xbf16>, vector<8x128xf32> -> vector<8x128xf32>
    %50 = arith.addf %44, %49 : vector<8x128xf32>
    %c1_46 = arith.constant 1 : index
    %c0_47 = arith.constant 0 : index
    %c0_48 = arith.constant 0 : index
    %51 = vector.load %arg3[%c1_46, %c0_47, %c0_48] : memref<5x1x128xf32, #tpu.memory_space<vmem>>, vector<1x1x128xf32>
    %52 = vector.shape_cast %51 : vector<1x1x128xf32> to vector<1x128xf32>
    %53 = vector.broadcast %52 : vector<1x128xf32> to vector<8x128xf32>
    %54 = arith.addf %50, %53 : vector<8x128xf32>
    %cst_49 = arith.constant 0.000000e+00 : f32
    %55 = vector.broadcast %cst_49 : f32 to vector<8x128xf32>
    %56 = arith.maximumf %54, %55 : vector<8x128xf32>
    %c1_50 = arith.constant 1 : index
    %c0_51 = arith.constant 0 : index
    %57 = vector.load %arg5[%c1_50, %c0_51] : memref<10x128xf32, #tpu.memory_space<vmem>>, vector<8x128xf32>
    tpu.vector_store %arg5[%c1_50, %c0_51], %56 {strides = array<i32>} : memref<10x128xf32, #tpu.memory_space<vmem>>, vector<8x128xf32>,
    %c0_52 = arith.constant 0 : index
    %c0_53 = arith.constant 0 : index
    %58 = vector.load %arg5[%c0_52, %c0_53] : memref<10x128xf32, #tpu.memory_space<vmem>>, vector<10x128xf32>
    %59 = vector.extract_strided_slice %58 {offsets = [0, 0], sizes = [8, 128], strides = [1, 1]} : vector<10x128xf32> to vector<8x128xf32>
    %60 = arith.truncf %59 : vector<8x128xf32> to vector<8x128xbf16>
    %c2_54 = arith.constant 2 : index
    %c0_55 = arith.constant 0 : index
    %c0_56 = arith.constant 0 : index
    %c0_57 = arith.constant 0 : index
    %61 = vector.load %arg2[%c2_54, %c0_55, %c0_56, %c0_57] : memref<5x3x128x128xbf16, #tpu.memory_space<vmem>>, vector<1x1x128x128xbf16>
    %62 = vector.shape_cast %61 : vector<1x1x128x128xbf16> to vector<128x128xbf16>
    %cst_58 = arith.constant dense<0.000000e+00> : vector<8x128xf32>
    %63 = tpu.matmul %60, %62, %cst_58 {dimension_numbers = #tpu.dot_dimension_numbers<[1], [0], [0], [1], [0, 0, 1, 1], [], []>} : vector<8x128xbf16>, vector<128x128xbf16>, vector<8x128xf32> -> vector<8x128xf32>
    %64 = vector.extract_strided_slice %58 {offsets = [1, 0], sizes = [8, 128], strides = [1, 1]} : vector<10x128xf32> to vector<8x128xf32>
    %65 = arith.truncf %64 : vector<8x128xf32> to vector<8x128xbf16>
    %c2_59 = arith.constant 2 : index
    %c1_60 = arith.constant 1 : index
    %c0_61 = arith.constant 0 : index
    %c0_62 = arith.constant 0 : index
    %66 = vector.load %arg2[%c2_59, %c1_60, %c0_61, %c0_62] : memref<5x3x128x128xbf16, #tpu.memory_space<vmem>>, vector<1x1x128x128xbf16>
    %67 = vector.shape_cast %66 : vector<1x1x128x128xbf16> to vector<128x128xbf16>
    %cst_63 = arith.constant dense<0.000000e+00> : vector<8x128xf32>
    %68 = tpu.matmul %65, %67, %cst_63 {dimension_numbers = #tpu.dot_dimension_numbers<[1], [0], [0], [1], [0, 0, 1, 1], [], []>} : vector<8x128xbf16>, vector<128x128xbf16>, vector<8x128xf32> -> vector<8x128xf32>
    %69 = arith.addf %63, %68 : vector<8x128xf32>
    %70 = vector.extract_strided_slice %58 {offsets = [2, 0], sizes = [8, 128], strides = [1, 1]} : vector<10x128xf32> to vector<8x128xf32>
    %71 = arith.truncf %70 : vector<8x128xf32> to vector<8x128xbf16>
    %c2_64 = arith.constant 2 : index
    %c2_65 = arith.constant 2 : index
    %c0_66 = arith.constant 0 : index
    %c0_67 = arith.constant 0 : index
    %72 = vector.load %arg2[%c2_64, %c2_65, %c0_66, %c0_67] : memref<5x3x128x128xbf16, #tpu.memory_space<vmem>>, vector<1x1x128x128xbf16>
    %73 = vector.shape_cast %72 : vector<1x1x128x128xbf16> to vector<128x128xbf16>
    %cst_68 = arith.constant dense<0.000000e+00> : vector<8x128xf32>
    %74 = tpu.matmul %71, %73, %cst_68 {dimension_numbers = #tpu.dot_dimension_numbers<[1], [0], [0], [1], [0, 0, 1, 1], [], []>} : vector<8x128xbf16>, vector<128x128xbf16>, vector<8x128xf32> -> vector<8x128xf32>
    %75 = arith.addf %69, %74 : vector<8x128xf32>
    %c2_69 = arith.constant 2 : index
    %c0_70 = arith.constant 0 : index
    %c0_71 = arith.constant 0 : index
    %76 = vector.load %arg3[%c2_69, %c0_70, %c0_71] : memref<5x1x128xf32, #tpu.memory_space<vmem>>, vector<1x1x128xf32>
    %77 = vector.shape_cast %76 : vector<1x1x128xf32> to vector<1x128xf32>
    %78 = vector.broadcast %77 : vector<1x128xf32> to vector<8x128xf32>
    %79 = arith.addf %75, %78 : vector<8x128xf32>
    %cst_72 = arith.constant 0.000000e+00 : f32
    %80 = vector.broadcast %cst_72 : f32 to vector<8x128xf32>
    %81 = arith.maximumf %79, %80 : vector<8x128xf32>
    %c1_73 = arith.constant 1 : index
    %c0_74 = arith.constant 0 : index
    %82 = vector.load %arg5[%c1_73, %c0_74] : memref<10x128xf32, #tpu.memory_space<vmem>>, vector<8x128xf32>
    tpu.vector_store %arg5[%c1_73, %c0_74], %81 {strides = array<i32>} : memref<10x128xf32, #tpu.memory_space<vmem>>, vector<8x128xf32>,
    %c0_75 = arith.constant 0 : index
    %c0_76 = arith.constant 0 : index
    %83 = vector.load %arg5[%c0_75, %c0_76] : memref<10x128xf32, #tpu.memory_space<vmem>>, vector<10x128xf32>
    %84 = vector.extract_strided_slice %83 {offsets = [0, 0], sizes = [8, 128], strides = [1, 1]} : vector<10x128xf32> to vector<8x128xf32>
    %85 = arith.truncf %84 : vector<8x128xf32> to vector<8x128xbf16>
    %c3 = arith.constant 3 : index
    %c0_77 = arith.constant 0 : index
    %c0_78 = arith.constant 0 : index
    %c0_79 = arith.constant 0 : index
    %86 = vector.load %arg2[%c3, %c0_77, %c0_78, %c0_79] : memref<5x3x128x128xbf16, #tpu.memory_space<vmem>>, vector<1x1x128x128xbf16>
    %87 = vector.shape_cast %86 : vector<1x1x128x128xbf16> to vector<128x128xbf16>
    %cst_80 = arith.constant dense<0.000000e+00> : vector<8x128xf32>
    %88 = tpu.matmul %85, %87, %cst_80 {dimension_numbers = #tpu.dot_dimension_numbers<[1], [0], [0], [1], [0, 0, 1, 1], [], []>} : vector<8x128xbf16>, vector<128x128xbf16>, vector<8x128xf32> -> vector<8x128xf32>
    %89 = vector.extract_strided_slice %83 {offsets = [1, 0], sizes = [8, 128], strides = [1, 1]} : vector<10x128xf32> to vector<8x128xf32>
    %90 = arith.truncf %89 : vector<8x128xf32> to vector<8x128xbf16>
    %c3_81 = arith.constant 3 : index
    %c1_82 = arith.constant 1 : index
    %c0_83 = arith.constant 0 : index
    %c0_84 = arith.constant 0 : index
    %91 = vector.load %arg2[%c3_81, %c1_82, %c0_83, %c0_84] : memref<5x3x128x128xbf16, #tpu.memory_space<vmem>>, vector<1x1x128x128xbf16>
    %92 = vector.shape_cast %91 : vector<1x1x128x128xbf16> to vector<128x128xbf16>
    %cst_85 = arith.constant dense<0.000000e+00> : vector<8x128xf32>
    %93 = tpu.matmul %90, %92, %cst_85 {dimension_numbers = #tpu.dot_dimension_numbers<[1], [0], [0], [1], [0, 0, 1, 1], [], []>} : vector<8x128xbf16>, vector<128x128xbf16>, vector<8x128xf32> -> vector<8x128xf32>
    %94 = arith.addf %88, %93 : vector<8x128xf32>
    %95 = vector.extract_strided_slice %83 {offsets = [2, 0], sizes = [8, 128], strides = [1, 1]} : vector<10x128xf32> to vector<8x128xf32>
    %96 = arith.truncf %95 : vector<8x128xf32> to vector<8x128xbf16>
    %c3_86 = arith.constant 3 : index
    %c2_87 = arith.constant 2 : index
    %c0_88 = arith.constant 0 : index
    %c0_89 = arith.constant 0 : index
    %97 = vector.load %arg2[%c3_86, %c2_87, %c0_88, %c0_89] : memref<5x3x128x128xbf16, #tpu.memory_space<vmem>>, vector<1x1x128x128xbf16>
    %98 = vector.shape_cast %97 : vector<1x1x128x128xbf16> to vector<128x128xbf16>
    %cst_90 = arith.constant dense<0.000000e+00> : vector<8x128xf32>
    %99 = tpu.matmul %96, %98, %cst_90 {dimension_numbers = #tpu.dot_dimension_numbers<[1], [0], [0], [1], [0, 0, 1, 1], [], []>} : vector<8x128xbf16>, vector<128x128xbf16>, vector<8x128xf32> -> vector<8x128xf32>
    %100 = arith.addf %94, %99 : vector<8x128xf32>
    %c3_91 = arith.constant 3 : index
    %c0_92 = arith.constant 0 : index
    %c0_93 = arith.constant 0 : index
    %101 = vector.load %arg3[%c3_91, %c0_92, %c0_93] : memref<5x1x128xf32, #tpu.memory_space<vmem>>, vector<1x1x128xf32>
    %102 = vector.shape_cast %101 : vector<1x1x128xf32> to vector<1x128xf32>
    %103 = vector.broadcast %102 : vector<1x128xf32> to vector<8x128xf32>
    %104 = arith.addf %100, %103 : vector<8x128xf32>
    %cst_94 = arith.constant 0.000000e+00 : f32
    %105 = vector.broadcast %cst_94 : f32 to vector<8x128xf32>
    %106 = arith.maximumf %104, %105 : vector<8x128xf32>
    %c1_95 = arith.constant 1 : index
    %c0_96 = arith.constant 0 : index
    %107 = vector.load %arg5[%c1_95, %c0_96] : memref<10x128xf32, #tpu.memory_space<vmem>>, vector<8x128xf32>
    tpu.vector_store %arg5[%c1_95, %c0_96], %106 {strides = array<i32>} : memref<10x128xf32, #tpu.memory_space<vmem>>, vector<8x128xf32>,
    %c0_97 = arith.constant 0 : index
    %c0_98 = arith.constant 0 : index
    %108 = vector.load %arg5[%c0_97, %c0_98] : memref<10x128xf32, #tpu.memory_space<vmem>>, vector<10x128xf32>
    %109 = vector.extract_strided_slice %108 {offsets = [0, 0], sizes = [8, 128], strides = [1, 1]} : vector<10x128xf32> to vector<8x128xf32>
    %110 = arith.truncf %109 : vector<8x128xf32> to vector<8x128xbf16>
    %c4 = arith.constant 4 : index
    %c0_99 = arith.constant 0 : index
    %c0_100 = arith.constant 0 : index
    %c0_101 = arith.constant 0 : index
    %111 = vector.load %arg2[%c4, %c0_99, %c0_100, %c0_101] : memref<5x3x128x128xbf16, #tpu.memory_space<vmem>>, vector<1x1x128x128xbf16>
    %112 = vector.shape_cast %111 : vector<1x1x128x128xbf16> to vector<128x128xbf16>
    %cst_102 = arith.constant dense<0.000000e+00> : vector<8x128xf32>
    %113 = tpu.matmul %110, %112, %cst_102 {dimension_numbers = #tpu.dot_dimension_numbers<[1], [0], [0], [1], [0, 0, 1, 1], [], []>} : vector<8x128xbf16>, vector<128x128xbf16>, vector<8x128xf32> -> vector<8x128xf32>
    %114 = vector.extract_strided_slice %108 {offsets = [1, 0], sizes = [8, 128], strides = [1, 1]} : vector<10x128xf32> to vector<8x128xf32>
    %115 = arith.truncf %114 : vector<8x128xf32> to vector<8x128xbf16>
    %c4_103 = arith.constant 4 : index
    %c1_104 = arith.constant 1 : index
    %c0_105 = arith.constant 0 : index
    %c0_106 = arith.constant 0 : index
    %116 = vector.load %arg2[%c4_103, %c1_104, %c0_105, %c0_106] : memref<5x3x128x128xbf16, #tpu.memory_space<vmem>>, vector<1x1x128x128xbf16>
    %117 = vector.shape_cast %116 : vector<1x1x128x128xbf16> to vector<128x128xbf16>
    %cst_107 = arith.constant dense<0.000000e+00> : vector<8x128xf32>
    %118 = tpu.matmul %115, %117, %cst_107 {dimension_numbers = #tpu.dot_dimension_numbers<[1], [0], [0], [1], [0, 0, 1, 1], [], []>} : vector<8x128xbf16>, vector<128x128xbf16>, vector<8x128xf32> -> vector<8x128xf32>
    %119 = arith.addf %113, %118 : vector<8x128xf32>
    %120 = vector.extract_strided_slice %108 {offsets = [2, 0], sizes = [8, 128], strides = [1, 1]} : vector<10x128xf32> to vector<8x128xf32>
    %121 = arith.truncf %120 : vector<8x128xf32> to vector<8x128xbf16>
    %c4_108 = arith.constant 4 : index
    %c2_109 = arith.constant 2 : index
    %c0_110 = arith.constant 0 : index
    %c0_111 = arith.constant 0 : index
    %122 = vector.load %arg2[%c4_108, %c2_109, %c0_110, %c0_111] : memref<5x3x128x128xbf16, #tpu.memory_space<vmem>>, vector<1x1x128x128xbf16>
    %123 = vector.shape_cast %122 : vector<1x1x128x128xbf16> to vector<128x128xbf16>
    %cst_112 = arith.constant dense<0.000000e+00> : vector<8x128xf32>
    %124 = tpu.matmul %121, %123, %cst_112 {dimension_numbers = #tpu.dot_dimension_numbers<[1], [0], [0], [1], [0, 0, 1, 1], [], []>} : vector<8x128xbf16>, vector<128x128xbf16>, vector<8x128xf32> -> vector<8x128xf32>
    %125 = arith.addf %119, %124 : vector<8x128xf32>
    %c4_113 = arith.constant 4 : index
    %c0_114 = arith.constant 0 : index
    %c0_115 = arith.constant 0 : index
    %126 = vector.load %arg3[%c4_113, %c0_114, %c0_115] : memref<5x1x128xf32, #tpu.memory_space<vmem>>, vector<1x1x128xf32>
    %127 = vector.shape_cast %126 : vector<1x1x128xf32> to vector<1x128xf32>
    %128 = vector.broadcast %127 : vector<1x128xf32> to vector<8x128xf32>
    %129 = arith.addf %125, %128 : vector<8x128xf32>
    %cst_116 = arith.constant 0.000000e+00 : f32
    %130 = vector.broadcast %cst_116 : f32 to vector<120x128xf32>
    %131 = tpu.concatenate %129, %130 in 0 : vector<8x128xf32>, vector<120x128xf32> -> vector<128x128xf32>
    %132 = tpu.transpose %131, [1, 0] : vector<128x128xf32> -> vector<128x128xf32>
    %133 = vector.extract_strided_slice %132 {offsets = [0, 0], sizes = [3, 128], strides = [1, 1]} : vector<128x128xf32> to vector<3x128xf32>
    %c0_117 = arith.constant 0 : index
    %c0_118 = arith.constant 0 : index
    %c0_119 = arith.constant 0 : index
    %134 = vector.load %arg4[%c0_117, %c0_118, %c0_119] : memref<1x3x128xf32, #tpu.memory_space<vmem>>, vector<1x3x128xf32>
    %135 = vector.shape_cast %134 : vector<1x3x128xf32> to vector<3x128xf32>
    %136 = vector.shape_cast %133 : vector<3x128xf32> to vector<1x3x128xf32>
    tpu.vector_store %arg4[%c0_117, %c0_118, %c0_119], %136 {strides = array<i32>} : memref<1x3x128xf32, #tpu.memory_space<vmem>>, vector<1x3x128xf32>,
    return
  }
  func.func @transform_0(%arg0: i32) -> (i32, i32, i32) {
    %c0_i32 = arith.constant 0 : i32
    %c0_i32_0 = arith.constant 0 : i32
    %c0_i32_1 = arith.constant 0 : i32
    return %arg0, %c0_i32, %c0_i32_0 : i32, i32, i32
  }
  func.func @transform_1(%arg0: i32) -> (i32, i32, i32, i32) {
    %c0_i32 = arith.constant 0 : i32
    %c0_i32_0 = arith.constant 0 : i32
    %c0_i32_1 = arith.constant 0 : i32
    %c0_i32_2 = arith.constant 0 : i32
    %c0_i32_3 = arith.constant 0 : i32
    return %c0_i32, %c0_i32_0, %c0_i32_1, %c0_i32_2 : i32, i32, i32, i32
  }
  func.func @transform_2(%arg0: i32) -> (i32, i32, i32) {
    %c0_i32 = arith.constant 0 : i32
    %c0_i32_0 = arith.constant 0 : i32
    %c0_i32_1 = arith.constant 0 : i32
    %c0_i32_2 = arith.constant 0 : i32
    return %c0_i32, %c0_i32_0, %c0_i32_1 : i32, i32, i32
  }
  func.func @transform_3(%arg0: i32) -> (i32, i32, i32) {
    %c0_i32 = arith.constant 0 : i32
    %c0_i32_0 = arith.constant 0 : i32
    %c0_i32_1 = arith.constant 0 : i32
    return %arg0, %c0_i32, %c0_i32_0 : i32, i32, i32
  }
}

</mosaic_0001>

<bundles_post_ra>
// kernel: tpu_custom_call.1
= control target key start
LH: loop header
LB: loop body
LE: loop exit
PB: predicated region body
PF: predicated region fallthrough
CT: control target
= control target key end

     0   :  { %8 = vsyncpa [#allocation4], 0  ;;  %s2775_s12 = smov 0   ;;  %s3002_s0 = inlined_call_operand.vmem [shape: f32[2,8,3], index: 0, kind: input, shape index: {}]   ;;  %s3003_s1 = inlined_call_operand.hbm [shape: bf16[5,3,128,128], index: 1, kind: input, shape index: {}]   ;;  %s3004_s2 = inlined_call_operand.vmem [shape: f32[5,1,128], index: 2, kind: input, shape index: {}]   ;;  %s3005_s3 = inlined_call_operand.vmem [shape: f32[2,3,128], index: 3, kind: output, shape index: {}]  }
   0x1 LB: > { %s2781_s13 = sadd.s32 4294967295, %s2748_s12   ;;  %p1994_p0 = scmp.ge.s32.totalorder %s2748_s12, 1  ;;  %s2748_s12 = sphi %s2775_s12, %s14_s12  }
   0x2   : > { %p113_p1 = scmp.lt.s32.totalorder %s2748_s12, 3  ;;  %s2750_s14 = smov [#allocation3]  }
   0x3   : > { %s125_s15 = sshll.u32 %s2750_s14, 4  ;;  %p3006_p3 = scmp.eq.s32.totalorder %s2781_s13, 0  ;;  %s126_s15 = int_to_ptr.vmem [resolvable:$true] %s125_s15 }
   0x4   : > { %p2785_p2 = pnand %p1994_p0, %p113_p1  ;;  %s2710_s20 = scalar_lea.hbm %s3003_s1, 15360 }
   0x5   : > { %p2711_p6 = scmp.ne.s32.totalorder %s3003_s1, %s2710_s20  ;;  %p2717_p10 = scmp.lt.u32.totalorder %s2710_s20, %s3003_s1 }
   0x6   : > { %s3008_s16 = scalar_select %p2785_p2, 1, 0 }
   0x7   : > { %p2571_p4 = pneg %p2785_p2 }
   0x9   : > { %p2794_p5 = pnand %p3006_p3, %p2571_p4 }
   0xb   : > { %p2712_p7 = pneg %p2794_p5 }
   0xd   : > { %p2713_p8 = pnand %p2712_p7, %p2711_p6 }
   0xf   : > { %p2714_p9 = pneg %p2713_p8 }
  0x11   : > { %p2719_p11 = pnand %p2717_p10, %p2714_p9 }
  0x13   : > { %2722 = shalt.err (!%p2719_p11)
}
  0x14   : > { %s2723_s25 = scalar_lea.vmem %s126_s15, 15360  ;;  %p2731_p1 = scmp.lt.s32.totalorder %s126_s15, %s126_s15 }
  0x15   : > { %p2724_p12 = scmp.ne.s32.totalorder %s126_s15, %s2723_s25  ;;  %p2732_p4 = scmp.lt.s32.totalorder %s2723_s25, %s2723_s25 }
  0x17   : > { %p2726_p13 = pnand %p2724_p12, %p2712_p7  ;;  %p2733_p3 = por %p2732_p4, %p2731_p1 }
  0x19   : > { %p2727_p0 = pneg %p2726_p13 }
  0x1b   : > { %p2734_p2 = pnand %p2733_p3, %p2727_p0 }
  0x1d   : > { %2737 = shalt.err (!%p2734_p2)
}
  0x1e   : > { %s2751_s26 = smov 64   ;;  %s2752_s27 = smov 4  }
  0x1f   : > { %2574 = dma.hbm_to_vmem [thread:$0]  (!%p2794_p5), %s3003_s1, 15360, %s126_s15, [#allocation4], %s2751_s26, %s2751_s26, %s2752_s27  }
  0x20   : > { %p3010_p6 = scmp.ne.s32.totalorder %s3008_s16, 0 }
  0x21   : > { %p3011_p8 = scmp.eq.s32.totalorder (!%p3010_p6), %s2781_s13, 0 }
  0x22   : > { %151 = sbr.rel (%p3010_p6) target bundleno = 1518 (0x5ee), region = 32 }
  0x29   : > { %2743 = dma.done.wait (%p3011_p8), [#allocation4], 15360   ;;  %p3012_p7 = pmov %p3011_p8 }
  0x2a   : > { %v2753_v0 = vmov 0.0   ;;  %vm2754_vm0 = vmmov 0   ;;  %v2590_v1 = vld [vmem:[#allocation3 + $0x40] sm:$0xff]   ;;  %v2592_v3 = vld [vmem:[#allocation3 + $0x48] sm:$0xff]   ;;  %p173_p2 = scmp.lt.s32.totalorder %s2781_s13, 1  ;;  %v2594_v5 = vld [vmem:[#allocation3 + $0x50] sm:$0xff]  }
  0x2b   : > { %2745 = vsyncadd (%p3012_p7), [#allocation4], 4294951936  ;;  %2267 = vmatprep.subr.bf16.mxu0 %v2753_v0  ;;  %182 = vst [vmem:[#allocation2] sm:$0x1] %v2753_v0  ;;  %2287 = vmatprep.subr.bf16.mxu1 %v2753_v0  ;;  %v2591_v2 = vld [vmem:[#allocation3] sm:$0xff]   ;;  %v2593_v4 = vld [vmem:[#allocation3 + $0x8] sm:$0xff]  }
  0x2c   : > { %183 = vst [vmem:[#allocation2 + $0x9] sm:$0x1] %v2753_v0  ;;  %2283 = vmatprep.mubr.msk.bf16.mxu0 %vm2754_vm0, %v2753_v0  ;;  %2303 = vmatprep.mubr.msk.bf16.mxu1 %vm2754_vm0, %v2753_v0  ;;  %s3014_s13 = smov (!%p173_p2, %s2781_s13), 1  ;;  %v2595_v6 = vld [vmem:[#allocation3 + $0x10] sm:$0xff]   ;;  %v2596_v7 = vld [vmem:[#allocation3 + $0x58] sm:$0xff]   ;;  %v2598_v9 = vld [vmem:[#allocation3 + $0x60] sm:$0xff]  }
  0x2d   : > { %2268 = vmatpush3.bf16.msra.mxu0 %v2590_v1  ;;  %2288 = vmatpush3.bf16.msra.mxu1 %v2591_v2  ;;  %s1999_s30 = sshll.u32 %s3014_s13, 3  ;;  %v2597_v8 = vld [vmem:[#allocation3 + $0x18] sm:$0xff]   ;;  %vm185_vm1 = vcmask 23552   ;;  %v2599_v10 = vld [vmem:[#allocation3 + $0x20] sm:$0xff]   ;;  %v2600_v13 = vld [vmem:[#allocation3 + $0x68] sm:$0xff]   ;;  %s2000_s19 = sshll.u32 %s3014_s13, 2 }
  0x2e   : > { %2269 = vmatprep.subr.bf16.mxu0 %v2753_v0  ;;  %2289 = vmatprep.subr.bf16.mxu1 %v2753_v0  ;;  %s176_s6 = scalar_lea.vmem %s3002_s0, %s1999_s30  ;;  %v2601_v14 = vld [vmem:[#allocation3 + $0x28] sm:$0xff]   ;;  %v2602_v15 = vld [vmem:[#allocation3 + $0x70] sm:$0xff]   ;;  %v2604_v17 = vld [vmem:[#allocation3 + $0x78] sm:$0xff]   ;;  %s180_s22 = scalar_lea.vmem %s3005_s3, %s2000_s19 }
  0x2f   : > { %v184_v11 = vld [vmem:[%s176_s6] sm:$0xff]  ;;  %v2605_v18 = vld [vmem:[#allocation3 + $0x38] sm:$0xff]   ;;  %v2606_v24 = vld [vmem:[#allocation3 + $0x80] sm:$0xff]  }
  0x30   : > { %v186_v12 = vsel %vm185_vm1, %v184_v11, 0.0  ;;  %v2603_v16 = vld [vmem:[#allocation3 + $0x30] sm:$0xff]   ;;  %v2607_v29 = vld [vmem:[#allocation3 + $0x88] sm:$0xff]   ;;  %v2609_v31 = vld [vmem:[#allocation3 + $0x98] sm:$0xff]  }
  0x31   : > { %2270 = vmatpush3.bf16.msra.mxu0 %v2592_v3  ;;  %2290 = vmatpush3.bf16.msra.mxu1 %v2593_v4  ;;  %187 = vst [vmem:[#allocation2 + $0x1] sm:$0xff] %v186_v12  ;;  %v2608_v30 = vld [vmem:[#allocation3 + $0x90] sm:$0xff]   ;;  %v2610_v32 = vld [vmem:[#allocation3 + $0xa0] sm:$0xff]   ;;  %v2611_v33 = vld [vmem:[#allocation3 + $0xa8] sm:$0xff]  }
  0x32   : > { %2271 = vmatprep.subr.bf16.mxu0 %v2753_v0  ;;  %2291 = vmatprep.subr.bf16.mxu1 %v2753_v0  ;;  %v2612_v34 = vld [vmem:[#allocation3 + $0xb0] sm:$0xff]   ;;  %v2613_v35 = vld [vmem:[#allocation3 + $0xb8] sm:$0xff]   ;;  %v2614_v36 = vld [vmem:[#allocation3 + $0xc0] sm:$0xff]  }
  0x33   : > { %v2616_v37 = vld [vmem:[#allocation3 + $0x100] sm:$0xff]   ;;  %v2615_v38 = vld [vmem:[#allocation3 + $0xc8] sm:$0xff]   ;;  %v2617_v40 = vld [vmem:[#allocation3 + $0xd0] sm:$0xff]  }
  0x34   : > { %v2618_v39 = vld [vmem:[#allocation3 + $0x108] sm:$0xff]   ;;  %v2620_v41 = vld [vmem:[#allocation3 + $0x110] sm:$0xff]   ;;  %v2619_v42 = vld [vmem:[#allocation3 + $0xd8] sm:$0xff]  }
  0x35   : > { %2272 = vmatpush3.bf16.msra.mxu0 %v2594_v5  ;;  %2292 = vmatpush3.bf16.msra.mxu1 %v2595_v6  ;;  %v2621_v43 = vld [vmem:[#allocation3 + $0xe0] sm:$0xff]   ;;  %v2622_v44 = vld [vmem:[#allocation3 + $0x118] sm:$0xff]   ;;  %v2623_v45 = vld [vmem:[#allocation3 + $0xe8] sm:$0xff]  }
  0x36   : > { %2273 = vmatprep.subr.bf16.mxu0 %v2753_v0  ;;  %2293 = vmatprep.subr.bf16.mxu1 %v2753_v0  ;;  %v2624_v46 = vld [vmem:[#allocation3 + $0x120] sm:$0xff]   ;;  %v2625_v47 = vld [vmem:[#allocation3 + $0xf0] sm:$0xff]   ;;  %v2626_v48 = vld [vmem:[#allocation3 + $0x128] sm:$0xff]  }
  0x37   : > { %v2627_v49 = vld [vmem:[#allocation3 + $0xf8] sm:$0xff]   ;;  %v2628_v50 = vld [vmem:[#allocation3 + $0x130] sm:$0xff]  }
  0x38   : > { %v188_v19 = vld [vmem:[#allocation2] sm:$0xff]  ;;  %v189_v20 = vld [vmem:[#allocation2 + $0x8] sm:$0x3] }
  0x39   : > { %2274 = vmatpush3.bf16.msra.mxu0 %v2596_v7  ;;  %2294 = vmatpush3.bf16.msra.mxu1 %v2597_v8  ;;  %v207_v21 = vpack.c.bf16 %v189_v20, %v188_v19  ;;  %v190_v26 = vpack.c.bf16 %v188_v19, %v188_v19  ;;  %v2629_v51 = vld [vmem:[#allocation3 + $0x138] sm:$0xff]   ;;  %v2025_v62 = vld [vmem:[%s3004_s2] ss:$0 sm:$0xff]  ;;  %v2635_v19 = vld [vmem:[#allocation3 + $0x168] sm:$0xff]  }
  0x3a   : > { %2275 = vmatprep.subr.bf16.mxu0 %v2753_v0  ;;  %2295 = vmatprep.subr.bf16.mxu1 %v2753_v0  ;;  %v2636_v20 = vld [vmem:[#allocation3 + $0x170] sm:$0xff]  }
  0x3b   : > { %v226_v22 = vshrl.u32 %v207_v21, 16  ;;  %v228_v23 = vshll.u32 %v207_v21, 16  ;;  %v427_v27 = vrot.slane %v207_v21, 1  ;;  %v2637_v21 = vld [vmem:[#allocation3 + $0x178] sm:$0xff]  }
  0x3d   : > { %2276 = vmatpush3.bf16.msra.mxu0 %v2598_v9  ;;  %2296 = vmatpush3.bf16.msra.mxu1 %v2599_v10  ;;  %v230_v25 = vrot.slane %v228_v23, 1  ;;  %v2638_v23 = vld [vmem:[#allocation3 + $0x180] sm:$0xff]  }
  0x3e   : > { %2277 = vmatprep.subr.bf16.mxu0 %v2753_v0  ;;  %2297 = vmatprep.subr.bf16.mxu1 %v2753_v0 }
  0x3f   : > { %v231_v28 = vor.u32 %v230_v25, %v226_v22  ;;  %v2639_v25 = vld [vmem:[#allocation3 + $0x188] sm:$0xff]  }
  0x41   : > { %2278 = vmatpush3.bf16.msra.mxu0 %v2600_v13  ;;  %2298 = vmatpush3.bf16.msra.mxu1 %v2601_v14  ;;  %v2630_v13 = vld [vmem:[#allocation3 + $0x140] sm:$0xff]  }
  0x42   : > { %2279 = vmatprep.subr.bf16.mxu0 %v2753_v0  ;;  %2299 = vmatprep.subr.bf16.mxu1 %v2753_v0 }
  0x45   : > { %2280 = vmatpush3.bf16.msra.mxu0 %v2602_v15  ;;  %2300 = vmatpush3.bf16.msra.mxu1 %v2603_v16  ;;  %v2631_v15 = vld [vmem:[#allocation3 + $0x148] sm:$0xff]   ;;  %v2632_v16 = vld [vmem:[#allocation3 + $0x150] sm:$0xff]  }
  0x46   : > { %2281 = vmatprep.subr.bf16.mxu0 %v2753_v0  ;;  %2301 = vmatprep.subr.bf16.mxu1 %v2753_v0 }
  0x49   : > { %2282 = vmatpush3.bf16.msra.mxu0 %v2604_v17  ;;  %2302 = vmatpush3.bf16.msra.mxu1 %v2605_v18  ;;  %v2633_v17 = vld [vmem:[#allocation3 + $0x158] sm:$0xff]   ;;  %v2634_v18 = vld [vmem:[#allocation3 + $0x160] sm:$0xff]  }
  0x4a   : > { %2307 = vmatprep.subr.bf16.mxu0 %v2753_v0  ;;  %2327 = vmatprep.subr.bf16.mxu1 %v2753_v0 }
  0x4c   : > { %2284 = vmatmul.mubr.bf16.vlgmr.msra.gmra.mrb[0].mxu0 %v231_v28  ;;  %2304 = vmatmul.mubr.bf16.vlgmr.msra.gmra.mrb[0].mxu1 %v190_v26  ;;  %v2642_v26 = vld [vmem:[#allocation3 + $0x1c8] sm:$0xff]   ;;  %v2644_v28 = vld [vmem:[#allocation3 + $0x1d0] sm:$0xff]  }
  0x4d   : > { %2308 = vmatpush3.bf16.msra.mxu0 %v2606_v24  ;;  %2323 = vmatprep.mubr.msk.bf16.mxu0 %vm2754_vm0, %v2753_v0  ;;  %v2640_v24 = vld [vmem:[#allocation3 + $0x1c0] sm:$0xff]  }
  0x4e   : > { %2309 = vmatprep.subr.bf16.mxu0 %v2753_v0  ;;  %2343 = vmatprep.mubr.msk.bf16.mxu1 %vm2754_vm0, %v2753_v0 }
  0x4f   : > { %2328 = vmatpush3.bf16.msra.mxu1 %v2616_v37  ;;  %v2652_v37 = vld [vmem:[#allocation3 + $0x1f0] sm:$0xff]  }
  0x50   : > { %2329 = vmatprep.subr.bf16.mxu1 %v2753_v0 }
  0x51   : > { %2310 = vmatpush3.bf16.msra.mxu0 %v2607_v29  ;;  %v2643_v29 = vld [vmem:[#allocation3 + $0x198] sm:$0xff]  }
  0x52   : > { %2311 = vmatprep.subr.bf16.mxu0 %v2753_v0 }
  0x53   : > { %2330 = vmatpush3.bf16.msra.mxu1 %v2618_v39 }
  0x54   : > { %2331 = vmatprep.subr.bf16.mxu1 %v2753_v0 }
  0x55   : > { %2312 = vmatpush3.bf16.msra.mxu0 %v2608_v30  ;;  %v2645_v30 = vld [vmem:[#allocation3 + $0x1a0] sm:$0xff]  }
  0x56   : > { %2313 = vmatprep.subr.bf16.mxu0 %v2753_v0 }
  0x57   : > { %2332 = vmatpush3.bf16.msra.mxu1 %v2620_v41 }
  0x58   : > { %2333 = vmatprep.subr.bf16.mxu1 %v2753_v0 }
  0x59   : > { %2314 = vmatpush3.bf16.msra.mxu0 %v2609_v31  ;;  %v2646_v31 = vld [vmem:[#allocation3 + $0x1d8] sm:$0xff]  }
  0x5a   : > { %2315 = vmatprep.subr.bf16.mxu0 %v2753_v0 }
  0x5b   : > { %2334 = vmatpush3.bf16.msra.mxu1 %v2622_v44 }
  0x5c   : > { %2335 = vmatprep.subr.bf16.mxu1 %v2753_v0 }
  0x5d   : > { %2316 = vmatpush3.bf16.msra.mxu0 %v2610_v32  ;;  %v2647_v32 = vld [vmem:[#allocation3 + $0x1a8] sm:$0xff]  }
  0x5e   : > { %2317 = vmatprep.subr.bf16.mxu0 %v2753_v0 }
  0x5f   : > { %2336 = vmatpush3.bf16.msra.mxu1 %v2624_v46 }
  0x60   : > { %2337 = vmatprep.subr.bf16.mxu1 %v2753_v0 }
  0x61   : > { %2318 = vmatpush3.bf16.msra.mxu0 %v2611_v33  ;;  %v2648_v33 = vld [vmem:[#allocation3 + $0x1e0] sm:$0xff]  }
  0x62   : > { %2319 = vmatprep.subr.bf16.mxu0 %v2753_v0 }
  0x63   : > { %2338 = vmatpush3.bf16.msra.mxu1 %v2626_v48 }
  0x64   : > { %2339 = vmatprep.subr.bf16.mxu1 %v2753_v0 }
  0x65   : > { %2320 = vmatpush3.bf16.msra.mxu0 %v2612_v34  ;;  %v2649_v34 = vld [vmem:[#allocation3 + $0x1b0] sm:$0xff]  }
  0x66   : > { %2321 = vmatprep.subr.bf16.mxu0 %v2753_v0 }
  0x67   : > { %2340 = vmatpush3.bf16.msra.mxu1 %v2628_v50 }
  0x68   : > { %2341 = vmatprep.subr.bf16.mxu1 %v2753_v0 }
  0x69   : > { %2322 = vmatpush3.bf16.msra.mxu0 %v2613_v35  ;;  %v2650_v35 = vld [vmem:[#allocation3 + $0x1e8] sm:$0xff]  }
  0x6a   : > { %2347 = vmatprep.subr.bf16.mxu0 %v2753_v0 }
  0x6b   : > { %2342 = vmatpush3.bf16.msra.mxu1 %v2629_v51 }
  0x6c   : > { %2324 = vmatmul.mubr.bf16.vlgmr.msra.gmra.mrb[4].mxu0 %v427_v27  ;;  %2367 = vmatprep.subr.bf16.mxu1 %v2753_v0  ;;  %v2641_v27 = vld [vmem:[#allocation3 + $0x190] sm:$0xff]  }
  0x6d   : > { %2363 = vmatprep.mubr.msk.bf16.mxu0 %vm2754_vm0, %v2753_v0  ;;  %2348 = vmatpush3.bf16.msra.mxu0 %v2614_v36  ;;  %v2651_v36 = vld [vmem:[#allocation3 + $0x1b8] sm:$0xff]  }
  0x6e   : > { %2349 = vmatprep.subr.bf16.mxu0 %v2753_v0 }
  0x71   : > { %2350 = vmatpush3.bf16.msra.mxu0 %v2615_v38  ;;  %v2653_v38 = vld [vmem:[#allocation3 + $0x1f8] sm:$0xff]  }
  0x72   : > { %2351 = vmatprep.subr.bf16.mxu0 %v2753_v0 }
  0x75   : > { %2352 = vmatpush3.bf16.msra.mxu0 %v2617_v40 }
  0x76   : > { %2353 = vmatprep.subr.bf16.mxu0 %v2753_v0 }
  0x79   : > { %2354 = vmatpush3.bf16.msra.mxu0 %v2619_v42 }
  0x7a   : > { %2355 = vmatprep.subr.bf16.mxu0 %v2753_v0 }
  0x7d   : > { %2356 = vmatpush3.bf16.msra.mxu0 %v2621_v43 }
  0x7e   : > { %2357 = vmatprep.subr.bf16.mxu0 %v2753_v0 }
  0x81   : > { %2358 = vmatpush3.bf16.msra.mxu0 %v2623_v45 }
  0x82   : > { %2359 = vmatprep.subr.bf16.mxu0 %v2753_v0 }
  0x85   : > { %2360 = vmatpush3.bf16.msra.mxu0 %v2625_v47 }
  0x86   : > { %2361 = vmatprep.subr.bf16.mxu0 %v2753_v0 }
  0x89   : > { %2362 = vmatpush3.bf16.msra.mxu0 %v2627_v49  ;;  %v2051_v49 = vld [vmem:[%s3004_s2 + $0x1] ss:$0 sm:$0xff] }
  0x8a   : > { %2387 = vmatprep.subr.bf16.mxu0 %v2753_v0 }
 0x11f   : > { %v315_v52 = vpop.f32.mrb[0].mxu0  ;;  %v403_v53 = vpop.f32.mrb[0].mxu1 }
 0x120   : > { %v2285_v54 = vpop.f32.mrb[1].mxu0  ;;  %v404_v55 = vadd.f32 %v403_v53, %v315_v52  ;;  %v2305_v56 = vpop.f32.mrb[1].mxu1 }
 0x121   : > { %v318_v57 = vpop.f32.mrb[2].mxu0  ;;  %v406_v58 = vpop.f32.mrb[2].mxu1 }
 0x122   : > { %v2286_v59 = vpop.f32.mrb[3].mxu0  ;;  %v2306_v60 = vpop.f32.mrb[3].mxu1 }
 0x13f   : > { %v511_v61 = vpop.f32.mrb[4].mxu0 }
 0x140   : > { %v517_v63 = vadd.f32 %v511_v61, %v404_v55  ;;  %v2325_v1 = vpop.f32.mrb[5].mxu0 }
 0x141   : > { %v514_v2 = vpop.f32.mrb[6].mxu0 }
 0x142   : > { %v525_v3 = vadd.f32 %v2025_v62, %v517_v63  ;;  %v2326_v4 = vpop.f32.mrb[7].mxu0  ;;  %v2654_v63 = vld [vmem:[#allocation3 + $0x200] sm:$0xff]   ;;  %v2655_v2 = vld [vmem:[#allocation3 + $0x208] sm:$0xff]  }
 0x143   : > { %v2657_v4 = vld [vmem:[#allocation3 + $0x218] sm:$0xff]  }
 0x144   : > { %v526_v5 = vmax.f32 %v525_v3, 0.0  ;;  %v2656_v3 = vld [vmem:[#allocation3 + $0x210] sm:$0xff]  }
 0x146   : > { %527 = vst [vmem:[#allocation2 + $0x1] sm:$0xff] %v526_v5  ;;  %v2658_v5 = vld [vmem:[#allocation3 + $0x220] sm:$0xff]  }
 0x14d   : > { %v528_v6 = vld [vmem:[#allocation2] sm:$0xff]  ;;  %v529_v7 = vld [vmem:[#allocation2 + $0x8] sm:$0x3] }
 0x14e   : > { %v530_v8 = vpack.c.bf16 %v528_v6, %v528_v6  ;;  %v548_v9 = vpack.c.bf16 %v529_v7, %v528_v6  ;;  %v2659_v6 = vld [vmem:[#allocation3 + $0x228] sm:$0xff]   ;;  %v2660_v7 = vld [vmem:[#allocation3 + $0x230] sm:$0xff]  }
 0x150   : > { %2364 = vmatmul.mubr.bf16.vlgmr.msra.gmra.mrb[8].mxu0 %v530_v8  ;;  %v569_v10 = vshll.u32 %v548_v9, 16  ;;  %v567_v11 = vshrl.u32 %v548_v9, 16  ;;  %v768_v22 = vrot.slane %v548_v9, 1  ;;  %v2661_v8 = vld [vmem:[#allocation3 + $0x238] sm:$0xff]  }
 0x151   : > { %2403 = vmatprep.mubr.msk.bf16.mxu0 %vm2754_vm0, %v2753_v0  ;;  %2388 = vmatpush3.bf16.msra.mxu0 %v2640_v24  ;;  %v2676_v24 = vld [vmem:[#allocation3 + $0x2b0] sm:$0xff]  }
 0x152   : > { %v571_v12 = vrot.slane %v569_v10, 1  ;;  %2389 = vmatprep.subr.bf16.mxu0 %v2753_v0  ;;  %v2662_v10 = vld [vmem:[#allocation3 + $0x240] sm:$0xff]  }
 0x154   : > { %v572_v14 = vor.u32 %v571_v12, %v567_v11  ;;  %v2664_v11 = vld [vmem:[#allocation3 + $0x280] sm:$0xff]   ;;  %v2663_v12 = vld [vmem:[#allocation3 + $0x248] sm:$0xff]  }
 0x155   : > { %2390 = vmatpush3.bf16.msra.mxu0 %v2642_v26 }
 0x156   : > { %2344 = vmatmul.mubr.bf16.vlgmr.msra.gmra.mrb[4].mxu1 %v572_v14  ;;  %2391 = vmatprep.subr.bf16.mxu0 %v2753_v0  ;;  %v2665_v14 = vld [vmem:[#allocation3 + $0x250] sm:$0xff]  }
 0x157   : > { %2368 = vmatpush3.bf16.msra.mxu1 %v2630_v13  ;;  %2383 = vmatprep.mubr.msk.bf16.mxu1 %vm2754_vm0, %v2753_v0  ;;  %v2666_v13 = vld [vmem:[#allocation3 + $0x288] sm:$0xff]  }
 0x158   : > { %2369 = vmatprep.subr.bf16.mxu1 %v2753_v0 }
 0x159   : > { %2392 = vmatpush3.bf16.msra.mxu0 %v2644_v28 }
 0x15a   : > { %2393 = vmatprep.subr.bf16.mxu0 %v2753_v0 }
 0x15b   : > { %2370 = vmatpush3.bf16.msra.mxu1 %v2631_v15  ;;  %v2668_v15 = vld [vmem:[#allocation3 + $0x290] sm:$0xff]  }
 0x15c   : > { %2371 = vmatprep.subr.bf16.mxu1 %v2753_v0 }
 0x15d   : > { %2394 = vmatpush3.bf16.msra.mxu0 %v2646_v31 }
 0x15e   : > { %2395 = vmatprep.subr.bf16.mxu0 %v2753_v0 }
 0x15f   : > { %2372 = vmatpush3.bf16.msra.mxu1 %v2632_v16  ;;  %v2667_v16 = vld [vmem:[#allocation3 + $0x258] sm:$0xff]  }
 0x160   : > { %2373 = vmatprep.subr.bf16.mxu1 %v2753_v0 }
 0x161   : > { %2396 = vmatpush3.bf16.msra.mxu0 %v2648_v33 }
 0x162   : > { %2397 = vmatprep.subr.bf16.mxu0 %v2753_v0 }
 0x163   : > { %2374 = vmatpush3.bf16.msra.mxu1 %v2633_v17  ;;  %v2669_v17 = vld [vmem:[#allocation3 + $0x260] sm:$0xff]  }
 0x164   : > { %2375 = vmatprep.subr.bf16.mxu1 %v2753_v0 }
 0x165   : > { %2398 = vmatpush3.bf16.msra.mxu0 %v2650_v35 }
 0x166   : > { %2399 = vmatprep.subr.bf16.mxu0 %v2753_v0 }
 0x167   : > { %2376 = vmatpush3.bf16.msra.mxu1 %v2634_v18  ;;  %v2670_v18 = vld [vmem:[#allocation3 + $0x298] sm:$0xff]  }
 0x168   : > { %2377 = vmatprep.subr.bf16.mxu1 %v2753_v0 }
 0x169   : > { %2400 = vmatpush3.bf16.msra.mxu0 %v2652_v37 }
 0x16a   : > { %2401 = vmatprep.subr.bf16.mxu0 %v2753_v0 }
 0x16b   : > { %2378 = vmatpush3.bf16.msra.mxu1 %v2635_v19  ;;  %v2671_v19 = vld [vmem:[#allocation3 + $0x268] sm:$0xff]  }
 0x16c   : > { %2379 = vmatprep.subr.bf16.mxu1 %v2753_v0 }
 0x16d   : > { %2402 = vmatpush3.bf16.msra.mxu0 %v2653_v38 }
 0x16e   : > { %2427 = vmatprep.subr.bf16.mxu0 %v2753_v0 }
 0x16f   : > { %2380 = vmatpush3.bf16.msra.mxu1 %v2636_v20  ;;  %v2672_v20 = vld [vmem:[#allocation3 + $0x2a0] sm:$0xff]  }
 0x170   : > { %2381 = vmatprep.subr.bf16.mxu1 %v2753_v0 }
 0x173   : > { %2382 = vmatpush3.bf16.msra.mxu1 %v2637_v21  ;;  %v2673_v21 = vld [vmem:[#allocation3 + $0x270] sm:$0xff]  }
 0x174   : > { %2407 = vmatprep.subr.bf16.mxu1 %v2753_v0 }
 0x176   : > { %2384 = vmatmul.mubr.bf16.vlgmr.msra.gmra.mrb[8].mxu1 %v768_v22  ;;  %v2674_v22 = vld [vmem:[#allocation3 + $0x2a8] sm:$0xff]  }
 0x177   : > { %2423 = vmatprep.mubr.msk.bf16.mxu1 %vm2754_vm0, %v2753_v0  ;;  %2408 = vmatpush3.bf16.msra.mxu1 %v2638_v23  ;;  %v2675_v23 = vld [vmem:[#allocation3 + $0x278] sm:$0xff]  }
 0x178   : > { %2409 = vmatprep.subr.bf16.mxu1 %v2753_v0 }
 0x17b   : > { %2410 = vmatpush3.bf16.msra.mxu1 %v2639_v25  ;;  %v2677_v25 = vld [vmem:[#allocation3 + $0x2b8] sm:$0xff]  }
 0x17c   : > { %2411 = vmatprep.subr.bf16.mxu1 %v2753_v0 }
 0x17f   : > { %2412 = vmatpush3.bf16.msra.mxu1 %v2641_v27 }
 0x180   : > { %2413 = vmatprep.subr.bf16.mxu1 %v2753_v0 }
 0x183   : > { %2414 = vmatpush3.bf16.msra.mxu1 %v2643_v29 }
 0x184   : > { %2415 = vmatprep.subr.bf16.mxu1 %v2753_v0 }
 0x187   : > { %2416 = vmatpush3.bf16.msra.mxu1 %v2645_v30 }
 0x188   : > { %2417 = vmatprep.subr.bf16.mxu1 %v2753_v0 }
 0x18b   : > { %2418 = vmatpush3.bf16.msra.mxu1 %v2647_v32 }
 0x18c   : > { %2419 = vmatprep.subr.bf16.mxu1 %v2753_v0 }
 0x18f   : > { %2420 = vmatpush3.bf16.msra.mxu1 %v2649_v34 }
 0x190   : > { %2421 = vmatprep.subr.bf16.mxu1 %v2753_v0 }
 0x193   : > { %2422 = vmatpush3.bf16.msra.mxu1 %v2651_v36  ;;  %v2077_v36 = vld [vmem:[%s3004_s2 + $0x2] ss:$0 sm:$0xff] }
 0x194   : > { %2447 = vmatprep.subr.bf16.mxu1 %v2753_v0 }
 0x223   : > { %v744_v39 = vpop.f32.mrb[8].mxu0 }
 0x224   : > { %v2365_v40 = vpop.f32.mrb[9].mxu0 }
 0x225   : > { %v747_v41 = vpop.f32.mrb[10].mxu0 }
 0x226   : > { %v2366_v42 = vpop.f32.mrb[11].mxu0 }
 0x229   : > { %v656_v43 = vpop.f32.mrb[4].mxu1 }
 0x22a   : > { %v745_v44 = vadd.f32 %v744_v39, %v656_v43  ;;  %v2345_v45 = vpop.f32.mrb[5].mxu1 }
 0x22b   : > { %v659_v46 = vpop.f32.mrb[6].mxu1 }
 0x22c   : > { %v2346_v47 = vpop.f32.mrb[7].mxu1 }
 0x249   : > { %v852_v48 = vpop.f32.mrb[8].mxu1 }
 0x24a   : > { %v858_v50 = vadd.f32 %v852_v48, %v745_v44  ;;  %v2385_v51 = vpop.f32.mrb[9].mxu1 }
 0x24b   : > { %v855_v52 = vpop.f32.mrb[10].mxu1 }
 0x24c   : > { %v867_v53 = vadd.f32 %v2051_v49, %v858_v50  ;;  %v2386_v54 = vpop.f32.mrb[11].mxu1  ;;  %v2678_v50 = vld [vmem:[#allocation3 + $0x2c0] sm:$0xff]   ;;  %v2679_v52 = vld [vmem:[#allocation3 + $0x2c8] sm:$0xff]  }
 0x24d   : > { %v2681_v54 = vld [vmem:[#allocation3 + $0x2d8] sm:$0xff]  }
 0x24e   : > { %v868_v55 = vmax.f32 %v867_v53, 0.0  ;;  %v2680_v53 = vld [vmem:[#allocation3 + $0x2d0] sm:$0xff]  }
 0x250   : > { %869 = vst [vmem:[#allocation2 + $0x1] sm:$0xff] %v868_v55  ;;  %v2682_v55 = vld [vmem:[#allocation3 + $0x2e0] sm:$0xff]  }
 0x257   : > { %v870_v56 = vld [vmem:[#allocation2] sm:$0xff]  ;;  %v871_v57 = vld [vmem:[#allocation2 + $0x8] sm:$0x3] }
 0x258   : > { %v872_v58 = vpack.c.bf16 %v870_v56, %v870_v56  ;;  %v890_v59 = vpack.c.bf16 %v871_v57, %v870_v56  ;;  %v2683_v56 = vld [vmem:[#allocation3 + $0x2e8] sm:$0xff]   ;;  %v2684_v57 = vld [vmem:[#allocation3 + $0x2f0] sm:$0xff]  }
 0x25a   : > { %2424 = vmatmul.mubr.bf16.vlgmr.msra.gmra.mrb[12].mxu1 %v872_v58  ;;  %v911_v60 = vshll.u32 %v890_v59, 16  ;;  %v909_v61 = vshrl.u32 %v890_v59, 16  ;;  %v1110_v9 = vrot.slane %v890_v59, 1  ;;  %v2685_v58 = vld [vmem:[#allocation3 + $0x2f8] sm:$0xff]  }
 0x25b   : > { %2463 = vmatprep.mubr.msk.bf16.mxu1 %vm2754_vm0, %v2753_v0  ;;  %2448 = vmatpush3.bf16.msra.mxu1 %v2664_v11  ;;  %v2700_v11 = vld [vmem:[#allocation3 + $0x370] sm:$0xff]  }
 0x25c   : > { %v913_v62 = vrot.slane %v911_v60, 1  ;;  %2449 = vmatprep.subr.bf16.mxu1 %v2753_v0  ;;  %v2686_v60 = vld [vmem:[#allocation3 + $0x300] sm:$0xff]  }
 0x25e   : > { %v914_v1 = vor.u32 %v913_v62, %v909_v61  ;;  %v2688_v61 = vld [vmem:[#allocation3 + $0x340] sm:$0xff]   ;;  %v2687_v62 = vld [vmem:[#allocation3 + $0x308] sm:$0xff]  }
 0x25f   : > { %2450 = vmatpush3.bf16.msra.mxu1 %v2666_v13 }
 0x260   : > { %2404 = vmatmul.mubr.bf16.vlgmr.msra.gmra.mrb[12].mxu0 %v914_v1  ;;  %2451 = vmatprep.subr.bf16.mxu1 %v2753_v0  ;;  %v2689_v1 = vld [vmem:[#allocation3 + $0x310] sm:$0xff]  }
 0x261   : > { %2428 = vmatpush3.bf16.msra.mxu0 %v2654_v63  ;;  %2443 = vmatprep.mubr.msk.bf16.mxu0 %vm2754_vm0, %v2753_v0  ;;  %v2690_v63 = vld [vmem:[#allocation3 + $0x348] sm:$0xff]  }
 0x262   : > { %2429 = vmatprep.subr.bf16.mxu0 %v2753_v0 }
 0x263   : > { %2452 = vmatpush3.bf16.msra.mxu1 %v2668_v15 }
 0x264   : > { %2453 = vmatprep.subr.bf16.mxu1 %v2753_v0 }
 0x265   : > { %2430 = vmatpush3.bf16.msra.mxu0 %v2655_v2  ;;  %v2692_v2 = vld [vmem:[#allocation3 + $0x350] sm:$0xff]  }
 0x266   : > { %2431 = vmatprep.subr.bf16.mxu0 %v2753_v0 }
 0x267   : > { %2454 = vmatpush3.bf16.msra.mxu1 %v2670_v18 }
 0x268   : > { %2455 = vmatprep.subr.bf16.mxu1 %v2753_v0 }
 0x269   : > { %2432 = vmatpush3.bf16.msra.mxu0 %v2656_v3  ;;  %v2691_v3 = vld [vmem:[#allocation3 + $0x318] sm:$0xff]  }
 0x26a   : > { %2433 = vmatprep.subr.bf16.mxu0 %v2753_v0 }
 0x26b   : > { %2456 = vmatpush3.bf16.msra.mxu1 %v2672_v20 }
 0x26c   : > { %2457 = vmatprep.subr.bf16.mxu1 %v2753_v0 }
 0x26d   : > { %2434 = vmatpush3.bf16.msra.mxu0 %v2657_v4  ;;  %v2693_v4 = vld [vmem:[#allocation3 + $0x320] sm:$0xff]  }
 0x26e   : > { %2435 = vmatprep.subr.bf16.mxu0 %v2753_v0 }
 0x26f   : > { %2458 = vmatpush3.bf16.msra.mxu1 %v2674_v22 }
 0x270   : > { %2459 = vmatprep.subr.bf16.mxu1 %v2753_v0 }
 0x271   : > { %2436 = vmatpush3.bf16.msra.mxu0 %v2658_v5  ;;  %v2694_v5 = vld [vmem:[#allocation3 + $0x358] sm:$0xff]  }
 0x272   : > { %2437 = vmatprep.subr.bf16.mxu0 %v2753_v0 }
 0x273   : > { %2460 = vmatpush3.bf16.msra.mxu1 %v2676_v24 }
 0x274   : > { %2461 = vmatprep.subr.bf16.mxu1 %v2753_v0 }
 0x275   : > { %2438 = vmatpush3.bf16.msra.mxu0 %v2659_v6  ;;  %v2695_v6 = vld [vmem:[#allocation3 + $0x328] sm:$0xff]  }
 0x276   : > { %2439 = vmatprep.subr.bf16.mxu0 %v2753_v0 }
 0x277   : > { %2462 = vmatpush3.bf16.msra.mxu1 %v2677_v25 }
 0x278   : > { %2487 = vmatprep.subr.bf16.mxu1 %v2753_v0 }
 0x279   : > { %2440 = vmatpush3.bf16.msra.mxu0 %v2660_v7  ;;  %v2696_v7 = vld [vmem:[#allocation3 + $0x360] sm:$0xff]  }
 0x27a   : > { %2441 = vmatprep.subr.bf16.mxu0 %v2753_v0 }
 0x27d   : > { %2442 = vmatpush3.bf16.msra.mxu0 %v2661_v8  ;;  %v2697_v8 = vld [vmem:[#allocation3 + $0x330] sm:$0xff]  }
 0x27e   : > { %2467 = vmatprep.subr.bf16.mxu0 %v2753_v0 }
 0x280   : > { %2444 = vmatmul.mubr.bf16.vlgmr.msra.gmra.mrb[16].mxu0 %v1110_v9  ;;  %v2698_v9 = vld [vmem:[#allocation3 + $0x368] sm:$0xff]  }
 0x281   : > { %2483 = vmatprep.mubr.msk.bf16.mxu0 %vm2754_vm0, %v2753_v0  ;;  %2468 = vmatpush3.bf16.msra.mxu0 %v2662_v10  ;;  %v2699_v10 = vld [vmem:[#allocation3 + $0x338] sm:$0xff]  }
 0x282   : > { %2469 = vmatprep.subr.bf16.mxu0 %v2753_v0 }
 0x285   : > { %2470 = vmatpush3.bf16.msra.mxu0 %v2663_v12  ;;  %v2701_v12 = vld [vmem:[#allocation3 + $0x378] sm:$0xff]  }
 0x286   : > { %2471 = vmatprep.subr.bf16.mxu0 %v2753_v0 }
 0x289   : > { %2472 = vmatpush3.bf16.msra.mxu0 %v2665_v14 }
 0x28a   : > { %2473 = vmatprep.subr.bf16.mxu0 %v2753_v0 }
 0x28d   : > { %2474 = vmatpush3.bf16.msra.mxu0 %v2667_v16 }
 0x28e   : > { %2475 = vmatprep.subr.bf16.mxu0 %v2753_v0 }
 0x291   : > { %2476 = vmatpush3.bf16.msra.mxu0 %v2669_v17 }
 0x292   : > { %2477 = vmatprep.subr.bf16.mxu0 %v2753_v0 }
 0x295   : > { %2478 = vmatpush3.bf16.msra.mxu0 %v2671_v19 }
 0x296   : > { %2479 = vmatprep.subr.bf16.mxu0 %v2753_v0 }
 0x299   : > { %2480 = vmatpush3.bf16.msra.mxu0 %v2673_v21 }
 0x29a   : > { %2481 = vmatprep.subr.bf16.mxu0 %v2753_v0 }
 0x29d   : > { %2482 = vmatpush3.bf16.msra.mxu0 %v2675_v23  ;;  %v2103_v23 = vld [vmem:[%s3004_s2 + $0x3] ss:$0 sm:$0xff] }
 0x29e   : > { %2507 = vmatprep.subr.bf16.mxu0 %v2753_v0 }
 0x32d   : > { %v1086_v26 = vpop.f32.mrb[12].mxu1 }
 0x32e   : > { %v2425_v27 = vpop.f32.mrb[13].mxu1 }
 0x32f   : > { %v1089_v28 = vpop.f32.mrb[14].mxu1 }
 0x330   : > { %v2426_v29 = vpop.f32.mrb[15].mxu1 }
 0x333   : > { %v998_v30 = vpop.f32.mrb[12].mxu0 }
 0x334   : > { %v1087_v31 = vadd.f32 %v1086_v26, %v998_v30  ;;  %v2405_v32 = vpop.f32.mrb[13].mxu0 }
 0x335   : > { %v1001_v33 = vpop.f32.mrb[14].mxu0 }
 0x336   : > { %v2406_v34 = vpop.f32.mrb[15].mxu0 }
 0x353   : > { %v1194_v35 = vpop.f32.mrb[16].mxu0 }
 0x354   : > { %v1200_v37 = vadd.f32 %v1194_v35, %v1087_v31  ;;  %v2445_v38 = vpop.f32.mrb[17].mxu0 }
 0x355   : > { %v1197_v39 = vpop.f32.mrb[18].mxu0 }
 0x356   : > { %v1209_v40 = vadd.f32 %v2077_v36, %v1200_v37  ;;  %v2446_v41 = vpop.f32.mrb[19].mxu0  ;;  %v2702_v37 = vld [vmem:[#allocation3 + $0x380] sm:$0xff]   ;;  %v2703_v39 = vld [vmem:[#allocation3 + $0x388] sm:$0xff]  }
 0x357   : > { %v2705_v41 = vld [vmem:[#allocation3 + $0x398] sm:$0xff]  }
 0x358   : > { %v1210_v42 = vmax.f32 %v1209_v40, 0.0  ;;  %v2704_v40 = vld [vmem:[#allocation3 + $0x390] sm:$0xff]  }
 0x35a   : > { %1211 = vst [vmem:[#allocation2 + $0x1] sm:$0xff] %v1210_v42  ;;  %v2706_v42 = vld [vmem:[#allocation3 + $0x3a0] sm:$0xff]  }
 0x361   : > { %v1212_v43 = vld [vmem:[#allocation2] sm:$0xff]  ;;  %v1213_v44 = vld [vmem:[#allocation2 + $0x8] sm:$0x3] }
 0x362   : > { %v1214_v45 = vpack.c.bf16 %v1212_v43, %v1212_v43  ;;  %v1232_v46 = vpack.c.bf16 %v1213_v44, %v1212_v43  ;;  %v2707_v43 = vld [vmem:[#allocation3 + $0x3a8] sm:$0xff]   ;;  %v2708_v44 = vld [vmem:[#allocation3 + $0x3b0] sm:$0xff]  }
 0x364   : > { %2484 = vmatmul.mubr.bf16.vlgmr.msra.gmra.mrb[20].mxu0 %v1214_v45  ;;  %v1253_v47 = vshll.u32 %v1232_v46, 16  ;;  %v1251_v48 = vshrl.u32 %v1232_v46, 16  ;;  %v1452_v59 = vrot.slane %v1232_v46, 1  ;;  %v2709_v45 = vld [vmem:[#allocation3 + $0x3b8] sm:$0xff]  }
 0x365   : > { %2523 = vmatprep.mubr.msk.bf16.mxu0 %vm2754_vm0, %v2753_v0  ;;  %2508 = vmatpush3.bf16.msra.mxu0 %v2688_v61 }
 0x366   : > { %v1255_v49 = vrot.slane %v1253_v47, 1  ;;  %2509 = vmatprep.subr.bf16.mxu0 %v2753_v0 }
 0x368   : > { %v1256_v51 = vor.u32 %v1255_v49, %v1251_v48 }
 0x369   : > { %2510 = vmatpush3.bf16.msra.mxu0 %v2690_v63 }
 0x36a   : > { %2464 = vmatmul.mubr.bf16.vlgmr.msra.gmra.mrb[16].mxu1 %v1256_v51  ;;  %2511 = vmatprep.subr.bf16.mxu0 %v2753_v0 }
 0x36b   : > { %2488 = vmatpush3.bf16.msra.mxu1 %v2678_v50  ;;  %2503 = vmatprep.mubr.msk.bf16.mxu1 %vm2754_vm0, %v2753_v0 }
 0x36c   : > { %2489 = vmatprep.subr.bf16.mxu1 %v2753_v0 }
 0x36d   : > { %2512 = vmatpush3.bf16.msra.mxu0 %v2692_v2 }
 0x36e   : > { %2513 = vmatprep.subr.bf16.mxu0 %v2753_v0 }
 0x36f   : > { %2490 = vmatpush3.bf16.msra.mxu1 %v2679_v52 }
 0x370   : > { %2491 = vmatprep.subr.bf16.mxu1 %v2753_v0 }
 0x371   : > { %2514 = vmatpush3.bf16.msra.mxu0 %v2694_v5 }
 0x372   : > { %2515 = vmatprep.subr.bf16.mxu0 %v2753_v0 }
 0x373   : > { %2492 = vmatpush3.bf16.msra.mxu1 %v2680_v53 }
 0x374   : > { %2493 = vmatprep.subr.bf16.mxu1 %v2753_v0 }
 0x375   : > { %2516 = vmatpush3.bf16.msra.mxu0 %v2696_v7 }
 0x376   : > { %2517 = vmatprep.subr.bf16.mxu0 %v2753_v0 }
 0x377   : > { %2494 = vmatpush3.bf16.msra.mxu1 %v2681_v54 }
 0x378   : > { %2495 = vmatprep.subr.bf16.mxu1 %v2753_v0 }
 0x379   : > { %2518 = vmatpush3.bf16.msra.mxu0 %v2698_v9 }
 0x37a   : > { %2519 = vmatprep.subr.bf16.mxu0 %v2753_v0 }
 0x37b   : > { %2496 = vmatpush3.bf16.msra.mxu1 %v2682_v55 }
 0x37c   : > { %2497 = vmatprep.subr.bf16.mxu1 %v2753_v0 }
 0x37d   : > { %2520 = vmatpush3.bf16.msra.mxu0 %v2700_v11 }
 0x37e   : > { %2521 = vmatprep.subr.bf16.mxu0 %v2753_v0 }
 0x37f   : > { %2498 = vmatpush3.bf16.msra.mxu1 %v2683_v56 }
 0x380   : > { %2499 = vmatprep.subr.bf16.mxu1 %v2753_v0 }
 0x381   : > { %2522 = vmatpush3.bf16.msra.mxu0 %v2701_v12 }
 0x382   : > { %2547 = vmatprep.subr.bf16.mxu0 %v2753_v0 }
 0x383   : > { %2500 = vmatpush3.bf16.msra.mxu1 %v2684_v57  ;;  %v2129_v57 = vld [vmem:[%s3004_s2 + $0x4] ss:$0 sm:$0xff] }
 0x384   : > { %2501 = vmatprep.subr.bf16.mxu1 %v2753_v0 }
 0x387   : > { %2502 = vmatpush3.bf16.msra.mxu1 %v2685_v58 }
 0x388   : > { %2527 = vmatprep.subr.bf16.mxu1 %v2753_v0 }
 0x38a   : > { %2504 = vmatmul.mubr.bf16.vlgmr.msra.gmra.mrb[20].mxu1 %v1452_v59 }
 0x38b   : > { %2543 = vmatprep.mubr.msk.bf16.mxu1 %vm2754_vm0, %v2753_v0  ;;  %2528 = vmatpush3.bf16.msra.mxu1 %v2686_v60 }
 0x38c   : > { %2529 = vmatprep.subr.bf16.mxu1 %v2753_v0 }
 0x38f   : > { %2530 = vmatpush3.bf16.msra.mxu1 %v2687_v62 }
 0x390   : > { %2531 = vmatprep.subr.bf16.mxu1 %v2753_v0 }
 0x393   : > { %2532 = vmatpush3.bf16.msra.mxu1 %v2689_v1 }
 0x394   : > { %2533 = vmatprep.subr.bf16.mxu1 %v2753_v0 }
 0x397   : > { %2534 = vmatpush3.bf16.msra.mxu1 %v2691_v3 }
 0x398   : > { %2535 = vmatprep.subr.bf16.mxu1 %v2753_v0 }
 0x39b   : > { %2536 = vmatpush3.bf16.msra.mxu1 %v2693_v4 }
 0x39c   : > { %2537 = vmatprep.subr.bf16.mxu1 %v2753_v0 }
 0x39f   : > { %2538 = vmatpush3.bf16.msra.mxu1 %v2695_v6 }
 0x3a0   : > { %2539 = vmatprep.subr.bf16.mxu1 %v2753_v0 }
 0x3a3   : > { %2540 = vmatpush3.bf16.msra.mxu1 %v2697_v8 }
 0x3a4   : > { %2541 = vmatprep.subr.bf16.mxu1 %v2753_v0 }
 0x3a7   : > { %2542 = vmatpush3.bf16.msra.mxu1 %v2699_v10 }
 0x437   : > { %v1428_v13 = vpop.f32.mrb[20].mxu0 }
 0x438   : > { %v2485_v14 = vpop.f32.mrb[21].mxu0 }
 0x439   : > { %v1431_v15 = vpop.f32.mrb[22].mxu0 }
 0x43a   : > { %v2486_v16 = vpop.f32.mrb[23].mxu0 }
 0x43d   : > { %v1340_v17 = vpop.f32.mrb[16].mxu1 }
 0x43e   : > { %v1429_v18 = vadd.f32 %v1428_v13, %v1340_v17  ;;  %v2465_v19 = vpop.f32.mrb[17].mxu1 }
 0x43f   : > { %v1343_v20 = vpop.f32.mrb[18].mxu1 }
 0x440   : > { %v2466_v21 = vpop.f32.mrb[19].mxu1 }
 0x45d   : > { %v1536_v22 = vpop.f32.mrb[20].mxu1 }
 0x45e   : > { %v1542_v24 = vadd.f32 %v1536_v22, %v1429_v18  ;;  %v2505_v25 = vpop.f32.mrb[21].mxu1 }
 0x45f   : > { %v1539_v26 = vpop.f32.mrb[22].mxu1 }
 0x460   : > { %v1551_v27 = vadd.f32 %v2103_v23, %v1542_v24  ;;  %v2506_v28 = vpop.f32.mrb[23].mxu1 }
 0x462   : > { %v1552_v29 = vmax.f32 %v1551_v27, 0.0 }
 0x464   : > { %1553 = vst [vmem:[#allocation2 + $0x1] sm:$0xff] %v1552_v29 }
 0x46b   : > { %v1554_v30 = vld [vmem:[#allocation2] sm:$0xff]  ;;  %v1555_v31 = vld [vmem:[#allocation2 + $0x8] sm:$0x3] }
 0x46c   : > { %v1556_v32 = vpack.c.bf16 %v1554_v30, %v1554_v30  ;;  %v1574_v33 = vpack.c.bf16 %v1555_v31, %v1554_v30 }
 0x46e   : > { %2544 = vmatmul.mubr.bf16.vlgmr.msra.gmra.mrb[24].mxu1 %v1556_v32  ;;  %v1595_v34 = vshll.u32 %v1574_v33, 16  ;;  %v1593_v35 = vshrl.u32 %v1574_v33, 16  ;;  %v1794_v46 = vrot.slane %v1574_v33, 1 }
 0x470   : > { %v1597_v36 = vrot.slane %v1595_v34, 1 }
 0x472   : > { %v1598_v38 = vor.u32 %v1597_v36, %v1593_v35 }
 0x474   : > { %2524 = vmatmul.mubr.bf16.vlgmr.msra.gmra.mrb[24].mxu0 %v1598_v38 }
 0x475   : > { %2548 = vmatpush3.bf16.msra.mxu0 %v2702_v37  ;;  %2563 = vmatprep.mubr.msk.bf16.mxu0 %vm2754_vm0, %v2753_v0 }
 0x476   : > { %2549 = vmatprep.subr.bf16.mxu0 %v2753_v0 }
 0x479   : > { %2550 = vmatpush3.bf16.msra.mxu0 %v2703_v39 }
 0x47a   : > { %2551 = vmatprep.subr.bf16.mxu0 %v2753_v0 }
 0x47d   : > { %2552 = vmatpush3.bf16.msra.mxu0 %v2704_v40 }
 0x47e   : > { %2553 = vmatprep.subr.bf16.mxu0 %v2753_v0 }
 0x481   : > { %2554 = vmatpush3.bf16.msra.mxu0 %v2705_v41 }
 0x482   : > { %2555 = vmatprep.subr.bf16.mxu0 %v2753_v0 }
 0x485   : > { %2556 = vmatpush3.bf16.msra.mxu0 %v2706_v42 }
 0x486   : > { %2557 = vmatprep.subr.bf16.mxu0 %v2753_v0 }
 0x489   : > { %2558 = vmatpush3.bf16.msra.mxu0 %v2707_v43 }
 0x48a   : > { %2559 = vmatprep.subr.bf16.mxu0 %v2753_v0 }
 0x48d   : > { %2560 = vmatpush3.bf16.msra.mxu0 %v2708_v44 }
 0x48e   : > { %2561 = vmatprep.subr.bf16.mxu0 %v2753_v0 }
 0x491   : > { %2562 = vmatpush3.bf16.msra.mxu0 %v2709_v45 }
 0x494   : > { %2564 = vmatmul.mubr.bf16.vlgmr.msra.gmra.mrb[28].mxu0 %v1794_v46 }
 0x541   : > { %v1770_v47 = vpop.f32.mrb[24].mxu1 }
 0x542   : > { %v2545_v48 = vpop.f32.mrb[25].mxu1 }
 0x543   : > { %v1773_v49 = vpop.f32.mrb[26].mxu1 }
 0x544   : > { %v2546_v50 = vpop.f32.mrb[27].mxu1 }
 0x547   : > { %v1682_v51 = vpop.f32.mrb[24].mxu0 }
 0x548   : > { %v1771_v52 = vadd.f32 %v1770_v47, %v1682_v51  ;;  %v2525_v53 = vpop.f32.mrb[25].mxu0 }
 0x549   : > { %v1685_v54 = vpop.f32.mrb[26].mxu0 }
 0x54a   : > { %v2526_v55 = vpop.f32.mrb[27].mxu0 }
 0x567   : > { %v1878_v56 = vpop.f32.mrb[28].mxu0 }
 0x568   : > { %v1884_v58 = vadd.f32 %v1878_v56, %v1771_v52  ;;  %v2565_v0 = vpop.f32.mrb[29].mxu0 }
 0x569   : > { %v1881_v59 = vpop.f32.mrb[30].mxu0 }
 0x56a   : > { %v2566_v60 = vpop.f32.mrb[31].mxu0  ;;  %v1893_v61 = vadd.f32 %v2129_v57, %v1884_v58 }
 0x56c   : > { %1894 = vxpose.xlu0.b32.start.end [1/1] (short) (narrow) %v1893_v61, 8 }
 0x5ec   : > { %v1910_v62 = vpop.trf.xlu0 }
 0x5ed   : > { %1926 = vst [vmem:[%s180_s22] sm:$0x7] %v1910_v62 }
 0x5ee PF: > { %s14_s12 = sadd.s32 1, %s2748_s12  }
 0x5ef   : > { %p11_p3 = scmp.ge.s32.totalorder %s14_s12, 4  }
 0x5f1   :  { %13 = sbr.rel (!%p11_p3) target bundleno = 1 (0x1), region = 85 }
 0x5f8   :  { %1946 = vsyncpa [#allocation4], 1 }
 0x5f9   :  { %1948 = vsyncpa [#allocation4 + $0x1], 1 }

</bundles_post_ra>
